<compile_context>
chip_gen: v7x
topology: tpu7x:2x2x1
jax: 0.10.0
libtpu: 0.0.40
codegen_flags: <defaults>
</compile_context>

<pallas_src>
import functools
import math

import jax
import jax.numpy as jnp
from jax.experimental import pallas as pl
from jax.experimental.pallas import tpu as pltpu


# ------------------------------ Pallas kernel ------------------------------ #

def _gated_conv_bn_kernel(xr_ref, t_ref, b_ref, fold_ref, expand_ref,
                          gamma_ref, beta_ref, o_ref, *, WoC, eps, inv_count):
    """Single step: fused conv(f|g) matmul -> gated activation -> BatchNorm2d.

    xr_ref     : (N*Ho, kh*Wp*Cin)   row-tap-gathered, padded, channels-last input
    t_ref      : (kh*Wp*Cin, 2*WoC)  column-Toeplitz weights (feature | gate)
    b_ref      : (1, 2*WoC)          lane-expanded biases    (feature | gate)
    fold_ref   : (WoC, Cout)         0/1 matrix: lane -> channel fold
    expand_ref : (Cout, WoC)         0/1 matrix: channel -> lane expand
    gamma_ref  : (1, Cout)           BatchNorm2d weight
    beta_ref   : (1, Cout)           BatchNorm2d bias
    o_ref      : (N*Ho, WoC)         lane-dense output slab
    """
    # Both convolutions (feature and gate) in ONE MXU pass: (N*Ho, K) @ (K, 2*WoC).
    acc = jnp.dot(xr_ref[...], t_ref[...], preferred_element_type=jnp.float32)
    acc = acc + b_ref[...]

    f = acc[:, :WoC]                       # lane-aligned static split (WoC % 128 == 0)
    g = acc[:, WoC:]
    y = jnp.maximum(f, 0.2 * f) * jax.nn.sigmoid(g)            # LeakyReLU(0.2) * sigmoid

    # Fused BatchNorm2d (training-mode batch statistics, biased variance).
    # Two-pass (centered) variance: numerically robust vs. E[y^2] - E[y]^2.
    sum_c = jnp.dot(y, fold_ref[...], preferred_element_type=jnp.float32)        # (N*Ho, Cout)
    mean_c = jnp.sum(sum_c, axis=0, keepdims=True) * inv_count                   # (1, Cout)
    mean_lane = jnp.dot(mean_c, expand_ref[...], preferred_element_type=jnp.float32)  # (1, WoC)
    d = y - mean_lane
    var_sum = jnp.dot(d * d, fold_ref[...], preferred_element_type=jnp.float32)  # (N*Ho, Cout)
    var_c = jnp.sum(var_sum, axis=0, keepdims=True) * inv_count                  # (1, Cout)
    inv_c = jax.lax.rsqrt(var_c + eps) * gamma_ref[...]                          # gamma / sqrt(var+eps)

    # Expand scale & shift to lanes in a single MXU pass: (2, Cout) @ (Cout, WoC).
    ss_lane = jnp.dot(jnp.concatenate([inv_c, beta_ref[...]], axis=0),
                      expand_ref[...], preferred_element_type=jnp.float32)       # (2, WoC)
    o_ref[...] = d * ss_lane[0:1, :] + ss_lane[1:2, :]
    # TODO(synk): BatchNorm2d running_mean / running_var (training-mode side state) is
    # not updated; only the forward output (which matches the reference) is produced.


# -------------------- one-time weight packing (outside forward) -------------------- #

def prepare_params(params, *, kernel_size, stride, padding, height, width):
    """Pack conv weights into a single column-Toeplitz matrix plus the small BN/fold
    helpers.  Runs once as plain XLA outside the per-forward path (no per-call kron
    construction)."""
    wf, bf, wg, bg, gamma, beta = params
    Cout, Cin, k, _ = wf.shape
    s, p = stride, padding
    Wp = width + 2 * p
    Wo = (Wp - k) // s + 1
    WoC = Wo * Cout

    # sel[j, wp, wo] = 1 iff padded input column wp feeds output column wo via tap j.
    wp_idx = jnp.arange(Wp)[None, :, None]
    wo_idx = jnp.arange(Wo)[None, None, :]
    j_idx = jnp.arange(k)[:, None, None]
    sel = (wp_idx == wo_idx * s + j_idx).astype(jnp.float32)            # (k, Wp, Wo)

    # T[(i, wp, cin), (wo, cout)] = sum_j sel[j, wp, wo] * w[cout, cin, i, j]
    def toeplitz(w):
        return jnp.einsum('jpw,ocij->ipcwo', sel, w).reshape(k * Wp * Cin, WoC)

    # Perf note: storing t_mat (and the gathered input) in bf16 would halve the dominant
    # DMA, but fails the 2e-3 tolerance vs. the f32 reference at this fan-in; kept f32.
    t_mat = jnp.concatenate([toeplitz(wf), toeplitz(wg)], axis=1)       # (K, 2*WoC)
    b_exp = jnp.concatenate([jnp.tile(bf, Wo), jnp.tile(bg, Wo)]).reshape(1, 2 * WoC)
    fold = jnp.tile(jnp.eye(Cout, dtype=jnp.float32), (Wo, 1))          # (WoC, Cout)
    expand = fold.T                                                     # (Cout, WoC)
    return (t_mat, b_exp, fold, expand,
            gamma.reshape(1, Cout), beta.reshape(1, Cout))


# --------------------------------- forward ---------------------------------- #

@functools.partial(jax.jit, static_argnames=("kernel_size", "stride", "padding"))
def gated_conv2d_forward(x, prepped, *, kernel_size, stride, padding):
    """Forward pass of GatedConv2dWithActivation.  x: (N, Cin, H, W) float32 -> NCHW."""
    t_mat, b_exp, fold, expand, gamma2, beta2 = prepped
    N, Cin, H, W = x.shape
    k, s, p = kernel_size, stride, padding
    Hp, Wp = H + 2 * p, W + 2 * p
    Ho = (Hp - k) // s + 1
    Wo = (Wp - k) // s + 1
    Cout = fold.shape[1]
    WoC = Wo * Cout
    M = N * Ho
    K = k * Wp * Cin
    assert t_mat.shape == (K, 2 * WoC), "prepared weights do not match input spatial size"
    # lane-density contract of this kernel (perf contract; fails loudly instead of
    # silently degrading to masked stores / mid-vreg splits):
    assert WoC % 128 == 0, "Wo*Cout must be a multiple of 128 (lane-aligned f|g split)"
    assert M % 8 == 0, "N*Ho must be a multiple of 8 (sublane-aligned output slab)"

    # Layout plumbing, all fused under this jit: NCHW -> NHWC, spatial pad, gather the
    # k row taps (stride handled here), flatten to (N*Ho, kh*Wp*Cin).
    xp = jnp.pad(x.transpose(0, 2, 3, 1), ((0, 0), (p, p), (p, p), (0, 0)))
    xr = jnp.stack([xp[:, i:i + (Ho - 1) * s + 1:s] for i in range(k)], axis=2)
    xr = xr.reshape(M, K)

    kernel = functools.partial(_gated_conv_bn_kernel, WoC=WoC, eps=1e-5,
                               inv_count=1.0 / float(N * Ho * Wo))

    out_flat = pl.pallas_call(
        kernel,
        out_shape=jax.ShapeDtypeStruct((M, WoC), jnp.float32),
        grid=(1,),                                          # single step: whole problem in one pass
        in_specs=[
            pl.BlockSpec((M, K), lambda i: (0, 0)),         # gathered input rows
            pl.BlockSpec((K, 2 * WoC), lambda i: (0, 0)),   # Toeplitz weights (f | g)
            pl.BlockSpec((1, 2 * WoC), lambda i: (0, 0)),   # biases (f | g)
            pl.BlockSpec((WoC, Cout), lambda i: (0, 0)),    # lane -> channel fold
            pl.BlockSpec((Cout, WoC), lambda i: (0, 0)),    # channel -> lane expand
            pl.BlockSpec((1, Cout), lambda i: (0, 0)),      # gamma
            pl.BlockSpec((1, Cout), lambda i: (0, 0)),      # beta
        ],
        out_specs=pl.BlockSpec((M, WoC), lambda i: (0, 0)),
        compiler_params=pltpu.CompilerParams(dimension_semantics=("arbitrary",)),
    )(xr, t_mat, b_exp, fold, expand, gamma2, beta2)

    # (N*Ho, Wo*Cout) -> (N, Ho, Wo, Cout) -> NCHW  (layout only, fused in this jit)
    return out_flat.reshape(N, Ho, Wo, Cout).transpose(0, 3, 1, 2)


# ------------------------- deterministic parameters ------------------------- #

def init_params(key, in_channels, out_channels, kernel_size):
    fan_in = in_channels * kernel_size * kernel_size
    std = math.sqrt(2.0 / fan_in)                 # kaiming_normal_ (a=0, fan_in)
    k_wf, k_wg, k_bf, k_bg = jax.random.split(key, 4)
    wshape = (out_channels, in_channels, kernel_size, kernel_size)
    wf = std * jax.random.normal(k_wf, wshape, jnp.float32)
    wg = std * jax.random.normal(k_wg, wshape, jnp.float32)
    bound = 1.0 / math.sqrt(fan_in)
    bf = jax.random.uniform(k_bf, (out_channels,), jnp.float32, -bound, bound)
    bg = jax.random.uniform(k_bg, (out_channels,), jnp.float32, -bound, bound)
    gamma = jnp.ones((out_channels,), jnp.float32)    # fresh BatchNorm2d weight
    beta = jnp.zeros((out_channels,), jnp.float32)    # fresh BatchNorm2d bias
    return wf, bf, wg, bg, gamma, beta


# -------------------------------- reference --------------------------------- #

def reference_forward(x, params, *, kernel_size, stride, padding):
    wf, bf, wg, bg, gamma, beta = params

    def conv(w, b):
        y = jax.lax.conv_general_dilated(
            x, w, (stride, stride), [(padding, padding), (padding, padding)],
            dimension_numbers=("NCHW", "OIHW", "NCHW"))
        return y + b.reshape(1, -1, 1, 1)

    f = conv(wf, bf)
    g = conv(wg, bg)
    y = jnp.where(f >= 0.0, f, 0.2 * f) * jax.nn.sigmoid(g)
    mean = y.mean(axis=(0, 2, 3), keepdims=True)
    var = ((y - mean) ** 2).mean(axis=(0, 2, 3), keepdims=True)
    return ((y - mean) * jax.lax.rsqrt(var + 1e-5) * gamma.reshape(1, -1, 1, 1)
            + beta.reshape(1, -1, 1, 1))


# ----------------------------------- main ------------------------------------ #

if __name__ == "__main__":
    # module config: GatedConv2dWithActivation(in=4, out=8, kernel_size=3, stride=1, padding=1)
    in_channels, out_channels, kernel_size, stride, padding = 4, 8, 3, 1, 1

    key = jax.random.PRNGKey(0)
    k_x, k_p = jax.random.split(key)
    x = jax.random.normal(k_x, (2, in_channels, 16, 16), jnp.float32)   # NCHW
    params = init_params(k_p, in_channels, out_channels, kernel_size)

    # One-time weight packing (outside the per-forward path).
    prepped = prepare_params(params, kernel_size=kernel_size, stride=stride,
                             padding=padding, height=16, width=16)
    prepped = jax.block_until_ready(prepped)

    out = gated_conv2d_forward(
        x, prepped, kernel_size=kernel_size, stride=stride, padding=padding)
    out = jax.block_until_ready(out)

    ref = reference_forward(
        x, params, kernel_size=kernel_size, stride=stride, padding=padding)
    assert out.shape == ref.shape == (2, out_channels, 16, 16)
    err = float(jnp.max(jnp.abs(out - ref)))
    assert err < 2e-3, f"mismatch vs. reference: {err}"

    print("KERNEL_OK")
</pallas_src>

<mosaic_0001>
module attributes {stable_mosaic.version = 11 : i64} {
  func.func @_gated_conv_bn_kernel(%arg0: i32, %arg1: memref<32x216xf32, #tpu.memory_space<vmem>>, %arg2: memref<216x256xf32, #tpu.memory_space<vmem>>, %arg3: memref<1x256xf32, #tpu.memory_space<vmem>>, %arg4: memref<128x8xf32, #tpu.memory_space<vmem>>, %arg5: memref<8x128xf32, #tpu.memory_space<vmem>>, %arg6: memref<1x8xf32, #tpu.memory_space<vmem>>, %arg7: memref<1x8xf32, #tpu.memory_space<vmem>>, %arg8: memref<32x128xf32, #tpu.memory_space<vmem>>) attributes {dimension_semantics = [#tpu.dimension_semantics<arbitrary>], iteration_bounds = array<i64: 1>, scalar_prefetch = 0 : i64, scratch_operands = 0 : i64, tpu.core_type = #tpu.core_type<tc>, window_params = [{pipeline_mode = #tpu.pipeline_mode<synchronous>, transform_indices = @transform_0, window_bounds = array<i64: 32, 216>}, {pipeline_mode = #tpu.pipeline_mode<synchronous>, transform_indices = @transform_1, window_bounds = array<i64: 216, 256>}, {pipeline_mode = #tpu.pipeline_mode<synchronous>, transform_indices = @transform_2, window_bounds = array<i64: 1, 256>}, {pipeline_mode = #tpu.pipeline_mode<synchronous>, transform_indices = @transform_3, window_bounds = array<i64: 128, 8>}, {pipeline_mode = #tpu.pipeline_mode<synchronous>, transform_indices = @transform_4, window_bounds = array<i64: 8, 128>}, {pipeline_mode = #tpu.pipeline_mode<synchronous>, transform_indices = @transform_5, window_bounds = array<i64: 1, 8>}, {pipeline_mode = #tpu.pipeline_mode<synchronous>, transform_indices = @transform_6, window_bounds = array<i64: 1, 8>}, {pipeline_mode = #tpu.pipeline_mode<synchronous>, transform_indices = @transform_7, window_bounds = array<i64: 32, 128>}]} {
    %c0 = arith.constant 0 : index
    %c0_0 = arith.constant 0 : index
    %0 = vector.load %arg1[%c0, %c0_0] : memref<32x216xf32, #tpu.memory_space<vmem>>, vector<32x216xf32>
    %c0_1 = arith.constant 0 : index
    %c0_2 = arith.constant 0 : index
    %1 = vector.load %arg2[%c0_1, %c0_2] : memref<216x256xf32, #tpu.memory_space<vmem>>, vector<216x256xf32>
    %cst = arith.constant dense<0.000000e+00> : vector<32x256xf32>
    %2 = tpu.matmul %0, %1, %cst {dimension_numbers = #tpu.dot_dimension_numbers<[1], [0], [0], [1], [0, 0, 1, 1], [], []>} : vector<32x216xf32>, vector<216x256xf32>, vector<32x256xf32> -> vector<32x256xf32>
    %c0_3 = arith.constant 0 : index
    %c0_4 = arith.constant 0 : index
    %3 = vector.load %arg3[%c0_3, %c0_4] : memref<1x256xf32, #tpu.memory_space<vmem>>, vector<1x256xf32>
    %4 = vector.broadcast %3 : vector<1x256xf32> to vector<32x256xf32>
    %5 = arith.addf %2, %4 : vector<32x256xf32>
    %6 = vector.extract_strided_slice %5 {offsets = [0, 0], sizes = [32, 128], strides = [1, 1]} : vector<32x256xf32> to vector<32x128xf32>
    %7 = vector.extract_strided_slice %5 {offsets = [0, 128], sizes = [32, 128], strides = [1, 1]} : vector<32x256xf32> to vector<32x128xf32>
    %cst_5 = arith.constant 2.000000e-01 : f32
    %8 = vector.broadcast %cst_5 : f32 to vector<32x128xf32>
    %9 = arith.mulf %8, %6 : vector<32x128xf32>
    %10 = arith.maximumf %6, %9 : vector<32x128xf32>
    %11 = arith.negf %7 : vector<32x128xf32>
    %12 = math.exp %11 : vector<32x128xf32>
    %cst_6 = arith.constant 1.000000e+00 : f32
    %13 = vector.broadcast %cst_6 : f32 to vector<32x128xf32>
    %14 = arith.addf %13, %12 : vector<32x128xf32>
    %15 = arith.divf %13, %14 : vector<32x128xf32>
    %16 = arith.mulf %10, %15 : vector<32x128xf32>
    %c0_7 = arith.constant 0 : index
    %c0_8 = arith.constant 0 : index
    %17 = vector.load %arg4[%c0_7, %c0_8] : memref<128x8xf32, #tpu.memory_space<vmem>>, vector<128x8xf32>
    %cst_9 = arith.constant dense<0.000000e+00> : vector<32x8xf32>
    %18 = tpu.matmul %16, %17, %cst_9 {dimension_numbers = #tpu.dot_dimension_numbers<[1], [0], [0], [1], [0, 0, 1, 1], [], []>} : vector<32x128xf32>, vector<128x8xf32>, vector<32x8xf32> -> vector<32x8xf32>
    %cst_10 = arith.constant dense<0.000000e+00> : vector<8xf32>
    %19 = vector.multi_reduction <add>, %18, %cst_10 [0] : vector<32x8xf32> to vector<8xf32>
    %20 = vector.shape_cast %19 : vector<8xf32> to vector<1x8xf32>
    %cst_11 = arith.constant 0.001953125 : f32
    %21 = vector.broadcast %cst_11 : f32 to vector<1x8xf32>
    %22 = arith.mulf %20, %21 : vector<1x8xf32>
    %c0_12 = arith.constant 0 : index
    %c0_13 = arith.constant 0 : index
    %23 = vector.load %arg5[%c0_12, %c0_13] : memref<8x128xf32, #tpu.memory_space<vmem>>, vector<8x128xf32>
    %cst_14 = arith.constant dense<0.000000e+00> : vector<1x128xf32>
    %24 = tpu.matmul %22, %23, %cst_14 {dimension_numbers = #tpu.dot_dimension_numbers<[1], [0], [0], [1], [0, 0, 1, 1], [], []>} : vector<1x8xf32>, vector<8x128xf32>, vector<1x128xf32> -> vector<1x128xf32>
    %25 = vector.broadcast %24 : vector<1x128xf32> to vector<32x128xf32>
    %26 = arith.subf %16, %25 : vector<32x128xf32>
    %27 = arith.mulf %26, %26 : vector<32x128xf32>
    %c0_15 = arith.constant 0 : index
    %c0_16 = arith.constant 0 : index
    %28 = vector.load %arg4[%c0_15, %c0_16] : memref<128x8xf32, #tpu.memory_space<vmem>>, vector<128x8xf32>
    %cst_17 = arith.constant dense<0.000000e+00> : vector<32x8xf32>
    %29 = tpu.matmul %27, %28, %cst_17 {dimension_numbers = #tpu.dot_dimension_numbers<[1], [0], [0], [1], [0, 0, 1, 1], [], []>} : vector<32x128xf32>, vector<128x8xf32>, vector<32x8xf32> -> vector<32x8xf32>
    %cst_18 = arith.constant dense<0.000000e+00> : vector<8xf32>
    %30 = vector.multi_reduction <add>, %29, %cst_18 [0] : vector<32x8xf32> to vector<8xf32>
    %31 = vector.shape_cast %30 : vector<8xf32> to vector<1x8xf32>
    %cst_19 = arith.constant 0.001953125 : f32
    %32 = vector.broadcast %cst_19 : f32 to vector<1x8xf32>
    %33 = arith.mulf %31, %32 : vector<1x8xf32>
    %cst_20 = arith.constant 9.99999974E-6 : f32
    %34 = vector.broadcast %cst_20 : f32 to vector<1x8xf32>
    %35 = arith.addf %33, %34 : vector<1x8xf32>
    %36 = math.rsqrt %35 : vector<1x8xf32>
    %c0_21 = arith.constant 0 : index
    %c0_22 = arith.constant 0 : index
    %37 = vector.load %arg6[%c0_21, %c0_22] : memref<1x8xf32, #tpu.memory_space<vmem>>, vector<1x8xf32>
    %38 = arith.mulf %36, %37 : vector<1x8xf32>
    %c0_23 = arith.constant 0 : index
    %c0_24 = arith.constant 0 : index
    %39 = vector.load %arg7[%c0_23, %c0_24] : memref<1x8xf32, #tpu.memory_space<vmem>>, vector<1x8xf32>
    %40 = tpu.concatenate %38, %39 in 0 : vector<1x8xf32>, vector<1x8xf32> -> vector<2x8xf32>
    %c0_25 = arith.constant 0 : index
    %c0_26 = arith.constant 0 : index
    %41 = vector.load %arg5[%c0_25, %c0_26] : memref<8x128xf32, #tpu.memory_space<vmem>>, vector<8x128xf32>
    %cst_27 = arith.constant dense<0.000000e+00> : vector<2x128xf32>
    %42 = tpu.matmul %40, %41, %cst_27 {dimension_numbers = #tpu.dot_dimension_numbers<[1], [0], [0], [1], [0, 0, 1, 1], [], []>} : vector<2x8xf32>, vector<8x128xf32>, vector<2x128xf32> -> vector<2x128xf32>
    %43 = vector.extract_strided_slice %42 {offsets = [0, 0], sizes = [1, 128], strides = [1, 1]} : vector<2x128xf32> to vector<1x128xf32>
    %44 = vector.broadcast %43 : vector<1x128xf32> to vector<32x128xf32>
    %45 = arith.mulf %26, %44 : vector<32x128xf32>
    %46 = vector.extract_strided_slice %42 {offsets = [1, 0], sizes = [1, 128], strides = [1, 1]} : vector<2x128xf32> to vector<1x128xf32>
    %47 = vector.broadcast %46 : vector<1x128xf32> to vector<32x128xf32>
    %48 = arith.addf %45, %47 : vector<32x128xf32>
    %c0_28 = arith.constant 0 : index
    %c0_29 = arith.constant 0 : index
    %49 = vector.load %arg8[%c0_28, %c0_29] : memref<32x128xf32, #tpu.memory_space<vmem>>, vector<32x128xf32>
    tpu.vector_store %arg8[%c0_28, %c0_29], %48 {strides = array<i32>} : memref<32x128xf32, #tpu.memory_space<vmem>>, vector<32x128xf32>,
    return
  }
  func.func @transform_0(%arg0: i32) -> (i32, i32) {
    %c0_i32 = arith.constant 0 : i32
    %c0_i32_0 = arith.constant 0 : i32
    %c0_i32_1 = arith.constant 0 : i32
    return %c0_i32, %c0_i32_0 : i32, i32
  }
  func.func @transform_1(%arg0: i32) -> (i32, i32) {
    %c0_i32 = arith.constant 0 : i32
    %c0_i32_0 = arith.constant 0 : i32
    %c0_i32_1 = arith.constant 0 : i32
    return %c0_i32, %c0_i32_0 : i32, i32
  }
  func.func @transform_2(%arg0: i32) -> (i32, i32) {
    %c0_i32 = arith.constant 0 : i32
    %c0_i32_0 = arith.constant 0 : i32
    %c0_i32_1 = arith.constant 0 : i32
    return %c0_i32, %c0_i32_0 : i32, i32
  }
  func.func @transform_3(%arg0: i32) -> (i32, i32) {
    %c0_i32 = arith.constant 0 : i32
    %c0_i32_0 = arith.constant 0 : i32
    %c0_i32_1 = arith.constant 0 : i32
    return %c0_i32, %c0_i32_0 : i32, i32
  }
  func.func @transform_4(%arg0: i32) -> (i32, i32) {
    %c0_i32 = arith.constant 0 : i32
    %c0_i32_0 = arith.constant 0 : i32
    %c0_i32_1 = arith.constant 0 : i32
    return %c0_i32, %c0_i32_0 : i32, i32
  }
  func.func @transform_5(%arg0: i32) -> (i32, i32) {
    %c0_i32 = arith.constant 0 : i32
    %c0_i32_0 = arith.constant 0 : i32
    %c0_i32_1 = arith.constant 0 : i32
    return %c0_i32, %c0_i32_0 : i32, i32
  }
  func.func @transform_6(%arg0: i32) -> (i32, i32) {
    %c0_i32 = arith.constant 0 : i32
    %c0_i32_0 = arith.constant 0 : i32
    %c0_i32_1 = arith.constant 0 : i32
    return %c0_i32, %c0_i32_0 : i32, i32
  }
  func.func @transform_7(%arg0: i32) -> (i32, i32) {
    %c0_i32 = arith.constant 0 : i32
    %c0_i32_0 = arith.constant 0 : i32
    %c0_i32_1 = arith.constant 0 : i32
    return %c0_i32, %c0_i32_0 : i32, i32
  }
}

</mosaic_0001>

<bundles_post_ra>
// kernel: gated_conv2d_forward.1
= control target key start
LH: loop header
LB: loop body
LE: loop exit
PB: predicated region body
PF: predicated region fallthrough
CT: control target
= control target key end

     0   :  { %vm100_vm0 = vcmask 719872   ;;  %vm927_vm1 = vmmov 0   ;;  %vm339_vm2 = vcmask 64512   ;;  %vm550_vm3 = vcmask 1040384   ;;  %s1307_s1 = inlined_call_operand.vmem [shape: f32[216,256], index: 1, kind: input, shape index: {}]   ;;  %s1308_s0 = inlined_call_operand.vmem [shape: f32[32,216], index: 0, kind: input, shape index: {}]   ;;  %s1309_s3 = inlined_call_operand.vmem [shape: f32[128,8], index: 3, kind: input, shape index: {}]   ;;  %s1310_s2 = inlined_call_operand.vmem [shape: f32[1,256], index: 2, kind: input, shape index: {}]   ;;  %s1311_s4 = inlined_call_operand.vmem [shape: f32[8,128], index: 4, kind: input, shape index: {}]   ;;  %s1312_s5 = inlined_call_operand.vmem [shape: f32[1,8], index: 5, kind: input, shape index: {}]   ;;  %s1313_s6 = inlined_call_operand.vmem [shape: f32[1,8], index: 6, kind: input, shape index: {}]   ;;  %s1314_s7 = inlined_call_operand.vmem [shape: f32[32,128], index: 7, kind: output, shape index: {}]  }
   0x1   :  { %v35_v0 = vld [vmem:[%s1307_s1 + $0x8] sm:$0xff]  ;;  %v37_v1 = vld [vmem:[%s1307_s1 + $0x18] sm:$0xff]  ;;  %v34_v2 = vld [vmem:[%s1307_s1] sm:$0xff] }
   0x2   :  { %v790_v3 = vpack.c.bf16 %v37_v1, %v35_v0  ;;  %v36_v4 = vld [vmem:[%s1307_s1 + $0x10] sm:$0xff]  ;;  %v39_v5 = vld [vmem:[%s1307_s1 + $0x28] sm:$0xff]  ;;  %v41_v6 = vld [vmem:[%s1307_s1 + $0x38] sm:$0xff] }
   0x3   :  { %v792_v7 = vpack.c.bf16 %v36_v4, %v34_v2  ;;  %v794_v8 = vpack.c.bf16 %v41_v6, %v39_v5  ;;  %v38_v9 = vld [vmem:[%s1307_s1 + $0x20] sm:$0xff]  ;;  %v40_v10 = vld [vmem:[%s1307_s1 + $0x30] sm:$0xff]  ;;  %v43_v11 = vld [vmem:[%s1307_s1 + $0x48] sm:$0xff] }
   0x4   :  { %791 = vmatprep.subr.bf16.mxu0 %v790_v3  ;;  %v45_v12 = vld [vmem:[%s1307_s1 + $0x58] sm:$0xff]  ;;  %v796_v13 = vpack.c.bf16 %v40_v10, %v38_v9  ;;  %v42_v15 = vld [vmem:[%s1307_s1 + $0x40] sm:$0xff]  ;;  %v44_v16 = vld [vmem:[%s1307_s1 + $0x50] sm:$0xff] }
   0x5   :  { %793 = vmatpush1.bf16.msra.mxu0 %v792_v7  ;;  %v798_v14 = vpack.c.bf16 %v45_v12, %v43_v11  ;;  %v47_v17 = vld [vmem:[%s1307_s1 + $0x68] sm:$0xff]  ;;  %v49_v18 = vld [vmem:[%s1307_s1 + $0x78] sm:$0xff]  ;;  %v800_v19 = vpack.c.bf16 %v44_v16, %v42_v15  ;;  %v46_v21 = vld [vmem:[%s1307_s1 + $0x60] sm:$0xff] }
   0x6   :  { %795 = vmatprep.subr.bf16.mxu0 %v794_v8  ;;  %v802_v20 = vpack.c.bf16 %v49_v18, %v47_v17  ;;  %v48_v22 = vld [vmem:[%s1307_s1 + $0x70] sm:$0xff]  ;;  %v51_v23 = vld [vmem:[%s1307_s1 + $0x88] sm:$0xff]  ;;  %v53_v24 = vld [vmem:[%s1307_s1 + $0x98] sm:$0xff] }
   0x7   :  { %v804_v25 = vpack.c.bf16 %v48_v22, %v46_v21  ;;  %v806_v26 = vpack.c.bf16 %v53_v24, %v51_v23  ;;  %v50_v27 = vld [vmem:[%s1307_s1 + $0x80] sm:$0xff]  ;;  %v52_v28 = vld [vmem:[%s1307_s1 + $0x90] sm:$0xff]  ;;  %v55_v29 = vld [vmem:[%s1307_s1 + $0xa8] sm:$0xff] }
   0x8   :  { %v57_v30 = vld [vmem:[%s1307_s1 + $0xb8] sm:$0xff]  ;;  %v808_v31 = vpack.c.bf16 %v52_v28, %v50_v27  ;;  %v54_v33 = vld [vmem:[%s1307_s1 + $0xa0] sm:$0xff]  ;;  %v56_v34 = vld [vmem:[%s1307_s1 + $0xb0] sm:$0xff] }
   0x9   :  { %797 = vmatpush1.bf16.msra.mxu0 %v796_v13  ;;  %v810_v32 = vpack.c.bf16 %v57_v30, %v55_v29  ;;  %v59_v35 = vld [vmem:[%s1307_s1 + $0xc8] sm:$0xff]  ;;  %v61_v36 = vld [vmem:[%s1307_s1 + $0xd8] sm:$0xff]  ;;  %v812_v38 = vpack.c.bf16 %v56_v34, %v54_v33  ;;  %v58_v40 = vld [vmem:[%s1307_s1 + $0xc0] sm:$0xff] }
   0xa   :  { %799 = vmatprep.subr.bf16.mxu0 %v798_v14  ;;  %v27_v37 = vld [vmem:[%s1308_s0 + $0x8] sm:$0xff]  ;;  %v814_v39 = vpack.c.bf16 %v61_v36, %v59_v35  ;;  %v60_v41 = vld [vmem:[%s1307_s1 + $0xd0] sm:$0xff]  ;;  %v65_v43 = vld [vmem:[%s1307_s1 + $0xf8] sm:$0xff] }
   0xb   :  { %649 = vmatprep.mubr.msk.f32.mxu0 %vm100_vm0, %v27_v37  ;;  %v63_v42 = vld [vmem:[%s1307_s1 + $0xe8] sm:$0xff]  ;;  %v816_v44 = vpack.c.bf16 %v60_v41, %v58_v40  ;;  %v62_v46 = vld [vmem:[%s1307_s1 + $0xe0] sm:$0xff]  ;;  %v64_v47 = vld [vmem:[%s1307_s1 + $0xf0] sm:$0xff] }
   0xc   :  { %v818_v45 = vpack.c.bf16 %v65_v43, %v63_v42  ;;  %v67_v48 = vld [vmem:[%s1307_s1 + $0x108] sm:$0xff]  ;;  %v69_v49 = vld [vmem:[%s1307_s1 + $0x118] sm:$0xff]  ;;  %v820_v50 = vpack.c.bf16 %v64_v47, %v62_v46  ;;  %v66_v52 = vld [vmem:[%s1307_s1 + $0x100] sm:$0xff] }
   0xd   :  { %801 = vmatpush1.bf16.msra.mxu0 %v800_v19  ;;  %v822_v51 = vpack.c.bf16 %v69_v49, %v67_v48  ;;  %v68_v53 = vld [vmem:[%s1307_s1 + $0x110] sm:$0xff]  ;;  %v71_v54 = vld [vmem:[%s1307_s1 + $0x128] sm:$0xff]  ;;  %v73_v55 = vld [vmem:[%s1307_s1 + $0x138] sm:$0xff]  ;;  %v90_v48 = vlaneseq }
   0xe   :  { %803 = vmatprep.subr.bf16.mxu0 %v802_v20  ;;  %v824_v56 = vpack.c.bf16 %v68_v53, %v66_v52  ;;  %v826_v57 = vpack.c.bf16 %v73_v55, %v71_v54  ;;  %v70_v58 = vld [vmem:[%s1307_s1 + $0x120] sm:$0xff]  ;;  %v72_v59 = vld [vmem:[%s1307_s1 + $0x130] sm:$0xff]  ;;  %v75_v60 = vld [vmem:[%s1307_s1 + $0x148] sm:$0xff] }
   0xf   :  { %v77_v61 = vld [vmem:[%s1307_s1 + $0x158] sm:$0xff]  ;;  %v828_v62 = vpack.c.bf16 %v72_v59, %v70_v58  ;;  %v74_v0 = vld [vmem:[%s1307_s1 + $0x140] sm:$0xff]  ;;  %v76_v1 = vld [vmem:[%s1307_s1 + $0x150] sm:$0xff]  ;;  %v1239_v49 = vshrl.u32 %v90_v48, 7 }
  0x10   :  { %v830_v63 = vpack.c.bf16 %v77_v61, %v75_v60  ;;  %v79_v2 = vld [vmem:[%s1307_s1 + $0x168] sm:$0xff]  ;;  %v81_v3 = vld [vmem:[%s1307_s1 + $0x178] sm:$0xff]  ;;  %v832_v4 = vpack.c.bf16 %v76_v1, %v74_v0  ;;  %v78_v6 = vld [vmem:[%s1307_s1 + $0x160] sm:$0xff] }
  0x11   :  { %805 = vmatpush1.bf16.msra.mxu0 %v804_v25  ;;  %v834_v5 = vpack.c.bf16 %v81_v3, %v79_v2  ;;  %v80_v7 = vld [vmem:[%s1307_s1 + $0x170] sm:$0xff]  ;;  %v83_v8 = vld [vmem:[%s1307_s1 + $0x188] sm:$0xff]  ;;  %v85_v9 = vld [vmem:[%s1307_s1 + $0x198] sm:$0xff]  ;;  %v1248_v0 = vsub.s32 0, %v1239_v49 }
  0x12   :  { %807 = vmatprep.subr.bf16.mxu0 %v806_v26  ;;  %v836_v10 = vpack.c.bf16 %v80_v7, %v78_v6  ;;  %v838_v11 = vpack.c.bf16 %v85_v9, %v83_v8  ;;  %v82_v12 = vld [vmem:[%s1307_s1 + $0x180] sm:$0xff]  ;;  %v84_v13 = vld [vmem:[%s1307_s1 + $0x190] sm:$0xff]  ;;  %v87_v15 = vld [vmem:[%s1307_s1 + $0x1a8] sm:$0xff] }
  0x13   :  { %v840_v14 = vpack.c.bf16 %v84_v13, %v82_v12  ;;  %v86_v16 = vld [vmem:[%s1307_s1 + $0x1a0] sm:$0xff]  ;;  %v29_v18 = vld [vmem:[%s1308_s0 + $0x18] sm:$0xff]  ;;  %v28_v19 = vld [vmem:[%s1308_s0 + $0x10] sm:$0xff] }
  0x14   :  { %v26_v17 = vld [vmem:[%s1308_s0] sm:$0xff]  ;;  %v31_v20 = vld [vmem:[%s1308_s0 + $0x28] sm:$0xff]  ;;  %v33_v22 = vld [vmem:[%s1308_s0 + $0x38] sm:$0xff] }
  0x15   :  { %809 = vmatpush1.bf16.msra.mxu0 %v808_v31  ;;  %v30_v21 = vld [vmem:[%s1308_s0 + $0x20] sm:$0xff]  ;;  %v32_v23 = vld [vmem:[%s1308_s0 + $0x30] sm:$0xff]  ;;  %v239_v25 = vld [vmem:[%s1309_s3 + $0x8] sm:$0xff] }
  0x16   :  { %811 = vmatprep.subr.bf16.mxu0 %v810_v32  ;;  %v238_v24 = vld [vmem:[%s1309_s3] sm:$0xff]  ;;  %v240_v27 = vld [vmem:[%s1309_s3 + $0x10] sm:$0xff]  ;;  %v241_v28 = vld [vmem:[%s1309_s3 + $0x18] sm:$0xff] }
  0x17   :  { %v1164_v26 = vpack.c.bf16 %v239_v25, %v238_v24  ;;  %v1174_v29 = vpack.c.bf16 %v241_v28, %v240_v27  ;;  %v242_v30 = vld [vmem:[%s1309_s3 + $0x20] sm:$0xff]  ;;  %v243_v31 = vld [vmem:[%s1309_s3 + $0x28] sm:$0xff]  ;;  %v244_v33 = vld [vmem:[%s1309_s3 + $0x30] sm:$0xff] }
  0x18   :  { %v1184_v32 = vpack.c.bf16 %v243_v31, %v242_v30  ;;  %v245_v34 = vld [vmem:[%s1309_s3 + $0x38] sm:$0xff]  ;;  %v246_v36 = vld [vmem:[%s1309_s3 + $0x40] sm:$0xff]  ;;  %v247_v37 = vld [vmem:[%s1309_s3 + $0x48] sm:$0xff] }
  0x19   :  { %813 = vmatpush1.bf16.msra.mxu0 %v812_v38  ;;  %843 = vmatprep.subr.bf16.mxu1 %v1164_v26  ;;  %v1194_v35 = vpack.c.bf16 %v245_v34, %v244_v33  ;;  %v1204_v38 = vpack.c.bf16 %v247_v37, %v246_v36  ;;  %v249_v40 = vld [vmem:[%s1309_s3 + $0x58] sm:$0xff]  ;;  %v250_v42 = vld [vmem:[%s1309_s3 + $0x60] sm:$0xff]  ;;  %v251_v43 = vld [vmem:[%s1309_s3 + $0x68] sm:$0xff] }
  0x1a   :  { %815 = vmatprep.subr.bf16.mxu0 %v814_v39  ;;  %845 = vmatpush3.bf16.msra.mxu1 %v1164_v26  ;;  %v248_v39 = vld [vmem:[%s1309_s3 + $0x50] sm:$0xff]  ;;  %v253_v46 = vld [vmem:[%s1309_s3 + $0x78] sm:$0xff] }
  0x1b   :  { %847 = vmatprep.subr.bf16.mxu1 %v1174_v29  ;;  %v1214_v41 = vpack.c.bf16 %v249_v40, %v248_v39 }
  0x1d   :  { %817 = vmatpush1.bf16.msra.mxu0 %v816_v44  ;;  %v1224_v44 = vpack.c.bf16 %v251_v43, %v250_v42 }
  0x1e   :  { %819 = vmatprep.subr.bf16.mxu0 %v818_v45  ;;  %849 = vmatpush3.bf16.msra.mxu1 %v1174_v29  ;;  %v252_v45 = vld [vmem:[%s1309_s3 + $0x70] sm:$0xff] }
  0x1f   :  { %851 = vmatprep.subr.bf16.mxu1 %v1184_v32  ;;  %v1234_v47 = vpack.c.bf16 %v253_v46, %v252_v45 }
  0x21   :  { %821 = vmatpush1.bf16.msra.mxu0 %v820_v50  ;;  %v96_v50 = vsub.s32 1, %v1239_v49 }
  0x22   :  { %823 = vmatprep.subr.bf16.mxu0 %v822_v51  ;;  %853 = vmatpush3.bf16.msra.mxu1 %v1184_v32  ;;  %v88_v51 = vld [vmem:[%s1310_s2] sm:$0x3] }
  0x23   :  { %855 = vmatprep.subr.bf16.mxu1 %v1194_v35  ;;  %v97_v52 = vrot.slane %v88_v51, %v96_v50  ;;  %v93_v6 = vrot.slane %v88_v51, %v1248_v0 }
  0x25   :  { %825 = vmatpush1.bf16.msra.mxu0 %v824_v56 }
  0x26   :  { %827 = vmatprep.subr.bf16.mxu0 %v826_v57  ;;  %857 = vmatpush3.bf16.msra.mxu1 %v1194_v35 }
  0x27   :  { %859 = vmatprep.subr.bf16.mxu1 %v1204_v38 }
  0x29   :  { %829 = vmatpush1.bf16.msra.mxu0 %v828_v62 }
  0x2a   :  { %831 = vmatprep.subr.bf16.mxu0 %v830_v63  ;;  %861 = vmatpush3.bf16.msra.mxu1 %v1204_v38 }
  0x2b   :  { %863 = vmatprep.subr.bf16.mxu1 %v1214_v41 }
  0x2d   :  { %833 = vmatpush1.bf16.msra.mxu0 %v832_v4 }
  0x2e   :  { %835 = vmatprep.subr.bf16.mxu0 %v834_v5  ;;  %865 = vmatpush3.bf16.msra.mxu1 %v1214_v41 }
  0x2f   :  { %867 = vmatprep.subr.bf16.mxu1 %v1224_v44 }
  0x31   :  { %837 = vmatpush1.bf16.msra.mxu0 %v836_v10 }
  0x32   :  { %839 = vmatprep.subr.bf16.mxu0 %v838_v11  ;;  %869 = vmatpush3.bf16.msra.mxu1 %v1224_v44 }
  0x33   :  { %871 = vmatprep.subr.bf16.mxu1 %v1234_v47 }
  0x35   :  { %841 = vmatpush1.bf16.msra.mxu0 %v840_v14 }
  0x36   :  { %165 = vmatprep.subr.mxu0 %v87_v15  ;;  %873 = vmatpush3.bf16.msra.mxu1 %v1234_v47 }
  0x37   :  { %875 = vmatprep.subr.bf16.mxu1 %v1164_v26 }
  0x39   :  { %166 = vmatpush1.msra.mxu0 %v86_v16 }
  0x3a   :  { %178 = vmatmul.mubr.f32.vlgmr.msra.gmra.mrb[0].mxu0 %v26_v17 }
  0x3b   :  { %650 = vmatprep.mubr.msk.f32.mxu0 %vm100_vm0, %v29_v18 }
  0x3e   :  { %184 = vmatmul.mubr.f32.gmra.mrb[2].mxu0 %v28_v19 }
  0x3f   :  { %651 = vmatprep.mubr.msk.f32.mxu0 %vm100_vm0, %v31_v20 }
  0x42   :  { %190 = vmatmul.mubr.f32.gmra.mrb[4].mxu0 %v30_v21 }
  0x43   :  { %652 = vmatprep.mubr.msk.f32.mxu0 %vm100_vm0, %v33_v22 }
  0x46   :  { %196 = vmatmul.mubr.f32.gmra.mrb[6].mxu0 %v32_v23 }
 0x10d   :  { %v179_v53 = vpop.f32.mrb[0].mxu0 }
 0x10e   :  { %v181_v54 = vpop.f32.mrb[1].mxu0  ;;  %v180_v10 = vadd.f32 %v179_v53, %v93_v6 }
 0x10f   :  { %v182_v55 = vadd.f32 %v181_v54, %v97_v52 }
 0x110   :  { %v202_v13 = vmul.f32 0.2, %v180_v10 }
 0x111   :  { %v653_v56 = vmul.f32 -1.442695, %v182_v55  ;;  %v185_v57 = vpop.f32.mrb[2].mxu0 }
 0x112   :  { %v187_v58 = vpop.f32.mrb[3].mxu0  ;;  %v186_v14 = vadd.f32 %v185_v57, %v93_v6  ;;  %v206_v17 = vmax.f32 %v180_v10, %v202_v13 }
 0x113   :  { %908 = vpow2.f32 %v653_v56  ;;  %v188_v59 = vadd.f32 %v187_v58, %v97_v52 }
 0x114   :  { %v203_v18 = vmul.f32 0.2, %v186_v14 }
 0x115   :  { %v654_v60 = vmul.f32 -1.442695, %v188_v59  ;;  %v191_v61 = vpop.f32.mrb[4].mxu0 }
 0x116   :  { %v193_v62 = vpop.f32.mrb[5].mxu0  ;;  %v192_v19 = vadd.f32 %v191_v61, %v93_v6  ;;  %v207_v23 = vmax.f32 %v186_v14, %v203_v18 }
 0x117   :  { %910 = vpow2.f32 %v654_v60  ;;  %v194_v63 = vadd.f32 %v193_v62, %v97_v52 }
 0x118   :  { %v204_v24 = vmul.f32 0.2, %v192_v19 }
 0x119   :  { %v655_v1 = vmul.f32 -1.442695, %v194_v63  ;;  %v197_v2 = vpop.f32.mrb[6].mxu0 }
 0x11a   :  { %v199_v3 = vpop.f32.mrb[7].mxu0  ;;  %v198_v25 = vadd.f32 %v197_v2, %v93_v6  ;;  %v208_v30 = vmax.f32 %v192_v19, %v204_v24  ;;  %v541_v24 = vld [vmem:[%s1312_s5] sm:$0x1] }
 0x11b   :  { %912 = vpow2.f32 %v655_v1  ;;  %v200_v4 = vadd.f32 %v199_v3, %v97_v52 }
 0x11c   :  { %v205_v31 = vmul.f32 0.2, %v198_v25 }
 0x11d   :  { %v909_v5 = vpop.eup %908  ;;  %v656_v7 = vmul.f32 -1.442695, %v200_v4 }
 0x11e   :  { %v222_v8 = vadd.f32 1.0, %v909_v5  ;;  %v209_v36 = vmax.f32 %v198_v25, %v205_v31 }
 0x11f   :  { %914 = vpow2.f32 %v656_v7 }
 0x120   :  { %916 = vrcp.f32 %v222_v8 }
 0x121   :  { %v911_v9 = vpop.eup %910 }
 0x122   :  { %v223_v11 = vadd.f32 1.0, %v911_v9 }
 0x124   :  { %918 = vrcp.f32 %v223_v11 }
 0x125   :  { %v913_v12 = vpop.eup %912 }
 0x126   :  { %v224_v15 = vadd.f32 1.0, %v913_v12 }
 0x128   :  { %920 = vrcp.f32 %v224_v15 }
 0x129   :  { %v915_v16 = vpop.eup %914 }
 0x12a   :  { %v917_v20 = vpop.eup %916  ;;  %v225_v21 = vadd.f32 1.0, %v915_v16 }
 0x12b   :  { %v1251_v22 = vmul.f32 %v917_v20, %v206_v17 }
 0x12c   :  { %922 = vrcp.f32 %v225_v21 }
 0x12d   :  { %736 = vmatprep.mubr.f32.mxu1 %v1251_v22 }
 0x12e   :  { %v919_v27 = vpop.eup %918 }
 0x12f   :  { %v235_v28 = vmul.f32 %v919_v27, %v207_v23  ;;  %v658_v27 = vld [vmem:[%s1313_s6] ss:$0 sm:$0xff] }
 0x131   :  { %737 = vmatmul.mubr.f32.vlgmr.msra.gmra.mrb[0].mxu1 %v235_v28 }
 0x132   :  { %v921_v33 = vpop.eup %920  ;;  %877 = vmatpush3.bf16.msra.mxu1 %v1164_v26  ;;  %v926_v26 = vmov 0.0  }
 0x133   :  { %v236_v34 = vmul.f32 %v921_v33, %v208_v30  ;;  %879 = vmatprep.subr.bf16.mxu1 %v1174_v29  ;;  %742 = vmatprep.subr.mxu0 %v926_v26 }
 0x134   :  { %744 = vmatprep.mubr.msk.f32.mxu0 %vm927_vm1, %v926_v26 }
 0x135   :  { %739 = vmatprep.mubr.f32.mxu1 %v236_v34 }
 0x136   :  { %v923_v37 = vpop.eup %922  ;;  %881 = vmatpush3.bf16.msra.mxu1 %v1174_v29  ;;  %v354_v29 = vld [vmem:[%s1311_s4] sm:$0xff] }
 0x137   :  { %v237_v39 = vmul.f32 %v923_v37, %v209_v36  ;;  %883 = vmatprep.subr.bf16.mxu1 %v1184_v32  ;;  %743 = vmatpush3.msra.mxu0 %v354_v29 }
 0x139   :  { %740 = vmatmul.mubr.f32.gmra.mrb[2].mxu1 %v237_v39 }
 0x13a   :  { %885 = vmatpush3.bf16.msra.mxu1 %v1184_v32 }
 0x13b   :  { %887 = vmatprep.subr.bf16.mxu1 %v1194_v35 }
 0x13e   :  { %889 = vmatpush3.bf16.msra.mxu1 %v1194_v35 }
 0x13f   :  { %891 = vmatprep.subr.bf16.mxu1 %v1204_v38 }
 0x142   :  { %893 = vmatpush3.bf16.msra.mxu1 %v1204_v38 }
 0x143   :  { %895 = vmatprep.subr.bf16.mxu1 %v1214_v41 }
 0x146   :  { %897 = vmatpush3.bf16.msra.mxu1 %v1214_v41 }
 0x147   :  { %899 = vmatprep.subr.bf16.mxu1 %v1224_v44 }
 0x14a   :  { %901 = vmatpush3.bf16.msra.mxu1 %v1224_v44 }
 0x14b   :  { %903 = vmatprep.subr.bf16.mxu1 %v1234_v47 }
 0x14e   :  { %905 = vmatpush3.bf16.msra.mxu1 %v1234_v47 }
 0x14f   :  { %785 = vmatprep.subr.mxu1 %v926_v26 }
 0x204   :  { %v738_v32 = vpop.f32.mrb[0].mxu1 }
 0x205   :  { %v341_v35 = vsel %vm339_vm2, %v738_v32, 0.0  ;;  %v320_v38 = vpop.f32.mrb[1].mxu1 }
 0x206   :  { %v340_v40 = vsel %vm339_vm2, %v320_v38, 0.0 }
 0x207   :  { %v342_v41 = vadd.f32 %v341_v35, %v340_v40 }
 0x20c   :  { %v741_v42 = vpop.f32.mrb[2].mxu1 }
 0x20d   :  { %v330_v43 = vpop.f32.mrb[3].mxu1  ;;  %v345_v46 = vsel %vm339_vm2, %v741_v42, 0.0 }
 0x20e   :  { %v343_v44 = vsel %vm339_vm2, %v330_v43, 0.0 }
 0x20f   :  { %v344_v45 = vadd.f32 %v343_v44, %v342_v41 }
 0x211   :  { %v346_v47 = vadd.f32 %v345_v46, %v344_v45 }
 0x213   :  { %v347_v48 = vrot.slane %v346_v47, 4 }
 0x215   :  { %v348_v51 = vadd.f32 %v347_v48, %v346_v47 }
 0x217   :  { %v349_v52 = vrot.slane %v348_v51, 2 }
 0x219   :  { %v350_v53 = vadd.f32 %v349_v52, %v348_v51 }
 0x21b   :  { %v351_v54 = vrot.slane %v350_v53, 1 }
 0x21d   :  { %v352_v55 = vadd.f32 %v351_v54, %v350_v53 }
 0x21f   :  { %v353_v56 = vmul.f32 0.001953125, %v352_v55 }
 0x221   :  { %745 = vmatmul.mubr.msk.f32.vlgmr.msra.gmra.mrb[8].mxu0 %vm339_vm2, %v353_v56 }
 0x2f4   :  { %v424_v57 = vpop.f32.mrb[8].mxu0 }
 0x2f5   :  { %v431_v58 = vrot.slane %v424_v57, %v1248_v0  ;;  %v746_v59 = vpop.f32.mrb[9].mxu0 }
 0x2f7   :  { %v433_v60 = vsub.f32 %v235_v28, %v431_v58  ;;  %v432_v61 = vsub.f32 %v1251_v22, %v431_v58  ;;  %v434_v62 = vsub.f32 %v236_v34, %v431_v58  ;;  %v435_v2 = vsub.f32 %v237_v39, %v431_v58 }
 0x2f9   :  { %v437_v63 = vmul.f32 %v433_v60, %v433_v60  ;;  %v436_v1 = vmul.f32 %v432_v61, %v432_v61  ;;  %v438_v3 = vmul.f32 %v434_v62, %v434_v62  ;;  %v439_v4 = vmul.f32 %v435_v2, %v435_v2 }
 0x2fb   :  { %779 = vmatprep.mubr.f32.mxu1 %v436_v1 }
 0x2fc   :  { %780 = vmatmul.mubr.f32.vlgmr.msra.gmra.mrb[4].mxu1 %v437_v63 }
 0x2fd   :  { %782 = vmatprep.mubr.f32.mxu1 %v438_v3  ;;  %786 = vmatpush3.msra.mxu1 %v354_v29 }
 0x300   :  { %783 = vmatmul.mubr.f32.gmra.mrb[6].mxu1 %v439_v4 }
 0x301   :  { %787 = vmatprep.mubr.msk.f32.mxu1 %vm927_vm1, %v926_v26 }
 0x3cf   :  { %v781_v5 = vpop.f32.mrb[4].mxu1 }
 0x3d0   :  { %v526_v6 = vsel %vm339_vm2, %v781_v5, 0.0  ;;  %v506_v7 = vpop.f32.mrb[5].mxu1 }
 0x3d1   :  { %v525_v8 = vsel %vm339_vm2, %v506_v7, 0.0 }
 0x3d2   :  { %v527_v9 = vadd.f32 %v526_v6, %v525_v8 }
 0x3d3   :  { %v784_v10 = vpop.f32.mrb[6].mxu1 }
 0x3d4   :  { %v516_v11 = vpop.f32.mrb[7].mxu1  ;;  %v530_v14 = vsel %vm339_vm2, %v784_v10, 0.0 }
 0x3d5   :  { %v528_v12 = vsel %vm339_vm2, %v516_v11, 0.0 }
 0x3d6   :  { %v529_v13 = vadd.f32 %v528_v12, %v527_v9 }
 0x3d8   :  { %v531_v15 = vadd.f32 %v530_v14, %v529_v13 }
 0x3da   :  { %v532_v16 = vrot.slane %v531_v15, 4 }
 0x3dc   :  { %v533_v17 = vadd.f32 %v532_v16, %v531_v15 }
 0x3de   :  { %v534_v18 = vrot.slane %v533_v17, 2 }
 0x3e0   :  { %v535_v19 = vadd.f32 %v534_v18, %v533_v17 }
 0x3e2   :  { %v536_v20 = vrot.slane %v535_v19, 1 }
 0x3e4   :  { %v537_v21 = vadd.f32 %v536_v20, %v535_v19 }
 0x3e6   :  { %v538_v22 = vmul.f32 0.001953125, %v537_v21 }
 0x3e8   :  { %v539_v23 = vadd.f32 1e-05, %v538_v22 }
 0x3ea   :  { %924 = vrsqrt.f32 %v539_v23 }
 0x3f4   :  { %v925_v25 = vpop.eup %924 }
 0x3f5   :  { %v542_v28 = vmul.f32 %v925_v25, %v541_v24 }
 0x3f7   :  { %v551_v30 = vsel %vm550_vm3, %v542_v28, %v658_v27 }
 0x3f8   :  { %788 = vmatmul.mubr.msk.f32.vlgmr.msra.gmra.mrb[8].mxu1 %vm339_vm2, %v551_v30 }
 0x4cb   :  { %v621_v31 = vpop.f32.mrb[8].mxu1 }
 0x4cc   :  { %v628_v33 = vrot.slane %v621_v31, %v1248_v0  ;;  %v789_v34 = vpop.f32.mrb[9].mxu1  ;;  %v636_v36 = vrot.slane %v621_v31, %v96_v50 }
 0x4ce   :  { %v629_v37 = vmul.f32 %v628_v33, %v432_v61  ;;  %v630_v39 = vmul.f32 %v628_v33, %v433_v60  ;;  %v631_v26 = vmul.f32 %v628_v33, %v434_v62  ;;  %v632_v29 = vmul.f32 %v628_v33, %v435_v2 }
 0x4d0   :  { %v637_v32 = vadd.f32 %v636_v36, %v629_v37  ;;  %v638_v35 = vadd.f32 %v636_v36, %v630_v39  ;;  %v639_v38 = vadd.f32 %v636_v36, %v631_v26  ;;  %v640_v40 = vadd.f32 %v636_v36, %v632_v29 }
 0x4d2   :  { %641 = vst [vmem:[%s1314_s7] sm:$0xff] %v637_v32  ;;  %642 = vst [vmem:[%s1314_s7 + $0x8] sm:$0xff] %v638_v35 }
 0x4d3   :  { %643 = vst [vmem:[%s1314_s7 + $0x10] sm:$0xff] %v639_v38  ;;  %644 = vst [vmem:[%s1314_s7 + $0x18] sm:$0xff] %v640_v40 }

</bundles_post_ra>
